<compile_context>
chip_gen: v5e
topology: v5e:2x2
jax: 0.10.0
libtpu: 0.0.40
codegen_flags: <defaults>
</compile_context>

<pallas_src>
import functools

import jax
import jax.numpy as jnp
from jax.experimental import pallas as pl
from jax.experimental.pallas import tpu as pltpu

_LANE = 128
_SUBLANE = 8


def _round_up(n, m):
    return ((n + m - 1) // m) * m


def _cdiv(a, b):
    return -(-a // b)


def _mlp_kernel(x_ref,
                w1_ref, b1_ref,
                w2_ref, b2_ref,
                w3_ref, b3_ref,
                w4_ref, b4_ref,
                w5_ref, b5_ref,
                wh_ref, bh_ref,
                o_ref):
    """Full forward pass of Net for one batch tile (bf16 MXU, f32 accumulate)."""
    h = x_ref[...].astype(jnp.float32)

    def linear(h, w_ref, b_ref, relu):
        y = jnp.dot(h.astype(jnp.bfloat16), w_ref[...],
                    preferred_element_type=jnp.float32) + b_ref[...]
        return jnp.maximum(y, 0.0) if relu else y

    h = linear(h, w1_ref, b1_ref, True)     # input_size -> 50  (padded), ReLU
    h = linear(h, w2_ref, b2_ref, True)     # 50        -> 100 (padded), ReLU
    h = linear(h, w3_ref, b3_ref, True)     # 100       -> 300 (padded), ReLU
    h = linear(h, w4_ref, b4_ref, True)     # 300       -> 50  (padded), ReLU
    h = linear(h, w5_ref, b5_ref, True)     # 50        -> 10  (padded), ReLU
    out = linear(h, wh_ref, bh_ref, False)  # head: 10 -> num_classes (padded), no ReLU
    o_ref[...] = out.astype(o_ref.dtype)


def prepare_params(params):
    """One-time host-side prep.

    Pads hidden/output feature dims to multiples of 128 and casts weights to
    bf16.  w1's *in* dim is intentionally left unpadded so x can be streamed
    without a column pad (its block uses the full input_size extent).
    Biases stay f32 (bias-add happens in f32 inside the kernel).
    """
    prepared = {}
    for idx in list(range(1, 6)) + ["h"]:
        w = params[f"w{idx}"]
        b = params[f"b{idx}"]
        in_p = w.shape[0] if idx == 1 else _round_up(w.shape[0], _LANE)
        out_p = _round_up(w.shape[1], _LANE)
        prepared[f"w{idx}"] = jnp.pad(
            w, ((0, in_p - w.shape[0]), (0, out_p - w.shape[1]))
        ).astype(jnp.bfloat16)
        prepared[f"b{idx}"] = jnp.pad(
            b, ((0, 0), (0, out_p - b.shape[1]))).astype(jnp.float32)
    return prepared


@functools.partial(jax.jit, static_argnames=("num_classes", "batch_tile"))
def net_forward(x, pparams, *, num_classes, batch_tile=1024):
    """Run the Net forward pass with a single Pallas TPU kernel.

    x: [B, input_size] float32
    pparams: output of prepare_params(...)
    Returns: [B, num_classes] float32
    """
    B, input_size = x.shape
    assert pparams["w1"].shape[0] == input_size, "params/input size mismatch"
    classes_pad = pparams["wh"].shape[1]

    # --- grid / tile shaping (all static Python ints under jit) ------------
    # Even-split the batch so per-tile padding stays < 8 rows, and force >= 2
    # grid steps for moderately large batches so v7x can use both TensorCores.
    num_tiles = max(1, _cdiv(B, batch_tile))
    if num_tiles == 1 and B > 256:
        num_tiles = 2
    bt = _round_up(_cdiv(B, num_tiles), _SUBLANE)
    B_pad = bt * num_tiles

    # Row-only pad; feature dim streams unpadded (full-extent last block dim).
    x_p = jnp.pad(x, ((0, B_pad - B), (0, 0)))

    weight_args = (
        pparams["w1"], pparams["b1"],
        pparams["w2"], pparams["b2"],
        pparams["w3"], pparams["b3"],
        pparams["w4"], pparams["b4"],
        pparams["w5"], pparams["b5"],
        pparams["wh"], pparams["bh"],
    )

    def resident_spec(arr):
        # Whole array as one block with a constant index map -> weights stay
        # resident in VMEM across the entire batch grid.
        return pl.BlockSpec(arr.shape, lambda i: (0, 0))

    in_specs = [pl.BlockSpec((bt, input_size), lambda i: (i, 0))]
    in_specs += [resident_spec(a) for a in weight_args]
    out_spec = pl.BlockSpec((bt, classes_pad), lambda i: (i, 0))

    # Advisory cost estimate over the *padded* problem actually executed.
    wkeys = list(range(1, 6)) + ["h"]
    flops = 2 * B_pad * sum(pparams[f"w{k}"].shape[0] * pparams[f"w{k}"].shape[1]
                            for k in wkeys)
    bytes_accessed = (
        x_p.size * 4                                        # f32 activations in
        + sum(pparams[f"w{k}"].size * 2 for k in wkeys)     # bf16 weights
        + sum(pparams[f"b{k}"].size * 4 for k in wkeys)     # f32 biases
        + B_pad * classes_pad * 4                           # f32 output
    )

    out_padded = pl.pallas_call(
        _mlp_kernel,
        out_shape=jax.ShapeDtypeStruct((B_pad, classes_pad), jnp.float32),
        grid_spec=pltpu.PrefetchScalarGridSpec(
            num_scalar_prefetch=0,
            grid=(num_tiles,),
            in_specs=in_specs,
            out_specs=out_spec,
        ),
        compiler_params=pltpu.CompilerParams(
            dimension_semantics=("parallel",),
            # Generous but safe on every generation (v7x scoped default is 32 MiB
            # with 64 MiB physical); per-tile footprint at bt=1024 is ~3 MiB.
            vmem_limit_bytes=32 * 1024 * 1024,
        ),
        cost_estimate=pl.CostEstimate(
            flops=flops, transcendentals=0, bytes_accessed=bytes_accessed),
    )(x_p, *weight_args)

    return out_padded[:B, :num_classes]


def init_params(key, input_size, num_classes):
    """Deterministic parameter init matching the PyTorch module's shapes.

    Weights are stored as (in_features, out_features), biases as (1, out_features).
    """
    dims = [(input_size, 50), (50, 100), (100, 300), (300, 50), (50, 10)]
    params = {}
    keys = jax.random.split(key, len(dims) + 1)
    for idx, (fan_in, fan_out) in enumerate(dims, start=1):
        kw, kb = jax.random.split(keys[idx - 1])
        bound = 1.0 / jnp.sqrt(fan_in)
        params[f"w{idx}"] = jax.random.uniform(
            kw, (fan_in, fan_out), jnp.float32, -bound, bound)
        params[f"b{idx}"] = jax.random.uniform(
            kb, (1, fan_out), jnp.float32, -bound, bound)
    kw, kb = jax.random.split(keys[-1])
    bound = 1.0 / jnp.sqrt(10)
    params["wh"] = jax.random.uniform(
        kw, (10, num_classes), jnp.float32, -bound, bound)
    params["bh"] = jax.random.uniform(
        kb, (1, num_classes), jnp.float32, -bound, bound)
    return params


def net_forward_ref(x, params):
    """Pure-JAX f32 reference for correctness checking."""
    h = x
    for idx in range(1, 6):
        h = jnp.maximum(h @ params[f"w{idx}"] + params[f"b{idx}"], 0.0)
    return h @ params["wh"] + params["bh"]


if __name__ == "__main__":
    key = jax.random.PRNGKey(0)
    k_param, k_x = jax.random.split(key)

    input_size = 32
    num_classes = 4
    batch = 8

    params = init_params(k_param, input_size, num_classes)
    pparams = prepare_params(params)   # pad + bf16 cast once, outside per-call path
    x = jax.random.normal(k_x, (batch, input_size), jnp.float32)

    out = net_forward(x, pparams, num_classes=num_classes)
    out = jax.block_until_ready(out)

    ref = net_forward_ref(x, params)
    assert out.shape == (batch, num_classes)
    # bf16 MXU feeds -> expect ~1e-2 relative deviation vs the f32 reference.
    assert jnp.allclose(out, ref, atol=5e-2, rtol=5e-2), "mismatch vs JAX reference"

    print("KERNEL_OK")
</pallas_src>

<mosaic_0001>
module attributes {stable_mosaic.version = 11 : i64} {
  func.func @_mlp_kernel(%arg0: i32, %arg1: memref<8x32xf32, #tpu.memory_space<vmem>>, %arg2: memref<32x128xbf16, #tpu.memory_space<vmem>>, %arg3: memref<1x128xf32, #tpu.memory_space<vmem>>, %arg4: memref<128x128xbf16, #tpu.memory_space<vmem>>, %arg5: memref<1x128xf32, #tpu.memory_space<vmem>>, %arg6: memref<128x384xbf16, #tpu.memory_space<vmem>>, %arg7: memref<1x384xf32, #tpu.memory_space<vmem>>, %arg8: memref<384x128xbf16, #tpu.memory_space<vmem>>, %arg9: memref<1x128xf32, #tpu.memory_space<vmem>>, %arg10: memref<128x128xbf16, #tpu.memory_space<vmem>>, %arg11: memref<1x128xf32, #tpu.memory_space<vmem>>, %arg12: memref<128x128xbf16, #tpu.memory_space<vmem>>, %arg13: memref<1x128xf32, #tpu.memory_space<vmem>>, %arg14: memref<8x128xf32, #tpu.memory_space<vmem>>) attributes {dimension_semantics = [#tpu.dimension_semantics<parallel>], iteration_bounds = array<i64: 1>, scalar_prefetch = 0 : i64, scratch_operands = 0 : i64, tpu.core_type = #tpu.core_type<tc>, window_params = [{transform_indices = @transform_0, window_bounds = array<i64: 8, 32>}, {pipeline_mode = #tpu.pipeline_mode<synchronous>, transform_indices = @transform_1, window_bounds = array<i64: 32, 128>}, {pipeline_mode = #tpu.pipeline_mode<synchronous>, transform_indices = @transform_2, window_bounds = array<i64: 1, 128>}, {pipeline_mode = #tpu.pipeline_mode<synchronous>, transform_indices = @transform_3, window_bounds = array<i64: 128, 128>}, {pipeline_mode = #tpu.pipeline_mode<synchronous>, transform_indices = @transform_4, window_bounds = array<i64: 1, 128>}, {pipeline_mode = #tpu.pipeline_mode<synchronous>, transform_indices = @transform_5, window_bounds = array<i64: 128, 384>}, {pipeline_mode = #tpu.pipeline_mode<synchronous>, transform_indices = @transform_6, window_bounds = array<i64: 1, 384>}, {pipeline_mode = #tpu.pipeline_mode<synchronous>, transform_indices = @transform_7, window_bounds = array<i64: 384, 128>}, {pipeline_mode = #tpu.pipeline_mode<synchronous>, transform_indices = @transform_8, window_bounds = array<i64: 1, 128>}, {pipeline_mode = #tpu.pipeline_mode<synchronous>, transform_indices = @transform_9, window_bounds = array<i64: 128, 128>}, {pipeline_mode = #tpu.pipeline_mode<synchronous>, transform_indices = @transform_10, window_bounds = array<i64: 1, 128>}, {pipeline_mode = #tpu.pipeline_mode<synchronous>, transform_indices = @transform_11, window_bounds = array<i64: 128, 128>}, {pipeline_mode = #tpu.pipeline_mode<synchronous>, transform_indices = @transform_12, window_bounds = array<i64: 1, 128>}, {transform_indices = @transform_13, window_bounds = array<i64: 8, 128>}]} {
    %c0 = arith.constant 0 : index
    %c0_0 = arith.constant 0 : index
    %0 = vector.load %arg1[%c0, %c0_0] : memref<8x32xf32, #tpu.memory_space<vmem>>, vector<8x32xf32>
    %1 = arith.truncf %0 : vector<8x32xf32> to vector<8x32xbf16>
    %c0_1 = arith.constant 0 : index
    %c0_2 = arith.constant 0 : index
    %2 = vector.load %arg2[%c0_1, %c0_2] : memref<32x128xbf16, #tpu.memory_space<vmem>>, vector<32x128xbf16>
    %cst = arith.constant dense<0.000000e+00> : vector<8x128xf32>
    %3 = tpu.matmul %1, %2, %cst {dimension_numbers = #tpu.dot_dimension_numbers<[1], [0], [0], [1], [0, 0, 1, 1], [], []>} : vector<8x32xbf16>, vector<32x128xbf16>, vector<8x128xf32> -> vector<8x128xf32>
    %c0_3 = arith.constant 0 : index
    %c0_4 = arith.constant 0 : index
    %4 = vector.load %arg3[%c0_3, %c0_4] : memref<1x128xf32, #tpu.memory_space<vmem>>, vector<1x128xf32>
    %5 = vector.broadcast %4 : vector<1x128xf32> to vector<8x128xf32>
    %6 = arith.addf %3, %5 : vector<8x128xf32>
    %cst_5 = arith.constant 0.000000e+00 : f32
    %7 = vector.broadcast %cst_5 : f32 to vector<8x128xf32>
    %8 = arith.maximumf %6, %7 : vector<8x128xf32>
    %9 = arith.truncf %8 : vector<8x128xf32> to vector<8x128xbf16>
    %c0_6 = arith.constant 0 : index
    %c0_7 = arith.constant 0 : index
    %10 = vector.load %arg4[%c0_6, %c0_7] : memref<128x128xbf16, #tpu.memory_space<vmem>>, vector<128x128xbf16>
    %cst_8 = arith.constant dense<0.000000e+00> : vector<8x128xf32>
    %11 = tpu.matmul %9, %10, %cst_8 {dimension_numbers = #tpu.dot_dimension_numbers<[1], [0], [0], [1], [0, 0, 1, 1], [], []>} : vector<8x128xbf16>, vector<128x128xbf16>, vector<8x128xf32> -> vector<8x128xf32>
    %c0_9 = arith.constant 0 : index
    %c0_10 = arith.constant 0 : index
    %12 = vector.load %arg5[%c0_9, %c0_10] : memref<1x128xf32, #tpu.memory_space<vmem>>, vector<1x128xf32>
    %13 = vector.broadcast %12 : vector<1x128xf32> to vector<8x128xf32>
    %14 = arith.addf %11, %13 : vector<8x128xf32>
    %cst_11 = arith.constant 0.000000e+00 : f32
    %15 = vector.broadcast %cst_11 : f32 to vector<8x128xf32>
    %16 = arith.maximumf %14, %15 : vector<8x128xf32>
    %17 = arith.truncf %16 : vector<8x128xf32> to vector<8x128xbf16>
    %c0_12 = arith.constant 0 : index
    %c0_13 = arith.constant 0 : index
    %18 = vector.load %arg6[%c0_12, %c0_13] : memref<128x384xbf16, #tpu.memory_space<vmem>>, vector<128x384xbf16>
    %cst_14 = arith.constant dense<0.000000e+00> : vector<8x384xf32>
    %19 = tpu.matmul %17, %18, %cst_14 {dimension_numbers = #tpu.dot_dimension_numbers<[1], [0], [0], [1], [0, 0, 1, 1], [], []>} : vector<8x128xbf16>, vector<128x384xbf16>, vector<8x384xf32> -> vector<8x384xf32>
    %c0_15 = arith.constant 0 : index
    %c0_16 = arith.constant 0 : index
    %20 = vector.load %arg7[%c0_15, %c0_16] : memref<1x384xf32, #tpu.memory_space<vmem>>, vector<1x384xf32>
    %21 = vector.broadcast %20 : vector<1x384xf32> to vector<8x384xf32>
    %22 = arith.addf %19, %21 : vector<8x384xf32>
    %cst_17 = arith.constant 0.000000e+00 : f32
    %23 = vector.broadcast %cst_17 : f32 to vector<8x384xf32>
    %24 = arith.maximumf %22, %23 : vector<8x384xf32>
    %25 = arith.truncf %24 : vector<8x384xf32> to vector<8x384xbf16>
    %c0_18 = arith.constant 0 : index
    %c0_19 = arith.constant 0 : index
    %26 = vector.load %arg8[%c0_18, %c0_19] : memref<384x128xbf16, #tpu.memory_space<vmem>>, vector<384x128xbf16>
    %cst_20 = arith.constant dense<0.000000e+00> : vector<8x128xf32>
    %27 = tpu.matmul %25, %26, %cst_20 {dimension_numbers = #tpu.dot_dimension_numbers<[1], [0], [0], [1], [0, 0, 1, 1], [], []>} : vector<8x384xbf16>, vector<384x128xbf16>, vector<8x128xf32> -> vector<8x128xf32>
    %c0_21 = arith.constant 0 : index
    %c0_22 = arith.constant 0 : index
    %28 = vector.load %arg9[%c0_21, %c0_22] : memref<1x128xf32, #tpu.memory_space<vmem>>, vector<1x128xf32>
    %29 = vector.broadcast %28 : vector<1x128xf32> to vector<8x128xf32>
    %30 = arith.addf %27, %29 : vector<8x128xf32>
    %cst_23 = arith.constant 0.000000e+00 : f32
    %31 = vector.broadcast %cst_23 : f32 to vector<8x128xf32>
    %32 = arith.maximumf %30, %31 : vector<8x128xf32>
    %33 = arith.truncf %32 : vector<8x128xf32> to vector<8x128xbf16>
    %c0_24 = arith.constant 0 : index
    %c0_25 = arith.constant 0 : index
    %34 = vector.load %arg10[%c0_24, %c0_25] : memref<128x128xbf16, #tpu.memory_space<vmem>>, vector<128x128xbf16>
    %cst_26 = arith.constant dense<0.000000e+00> : vector<8x128xf32>
    %35 = tpu.matmul %33, %34, %cst_26 {dimension_numbers = #tpu.dot_dimension_numbers<[1], [0], [0], [1], [0, 0, 1, 1], [], []>} : vector<8x128xbf16>, vector<128x128xbf16>, vector<8x128xf32> -> vector<8x128xf32>
    %c0_27 = arith.constant 0 : index
    %c0_28 = arith.constant 0 : index
    %36 = vector.load %arg11[%c0_27, %c0_28] : memref<1x128xf32, #tpu.memory_space<vmem>>, vector<1x128xf32>
    %37 = vector.broadcast %36 : vector<1x128xf32> to vector<8x128xf32>
    %38 = arith.addf %35, %37 : vector<8x128xf32>
    %cst_29 = arith.constant 0.000000e+00 : f32
    %39 = vector.broadcast %cst_29 : f32 to vector<8x128xf32>
    %40 = arith.maximumf %38, %39 : vector<8x128xf32>
    %41 = arith.truncf %40 : vector<8x128xf32> to vector<8x128xbf16>
    %c0_30 = arith.constant 0 : index
    %c0_31 = arith.constant 0 : index
    %42 = vector.load %arg12[%c0_30, %c0_31] : memref<128x128xbf16, #tpu.memory_space<vmem>>, vector<128x128xbf16>
    %cst_32 = arith.constant dense<0.000000e+00> : vector<8x128xf32>
    %43 = tpu.matmul %41, %42, %cst_32 {dimension_numbers = #tpu.dot_dimension_numbers<[1], [0], [0], [1], [0, 0, 1, 1], [], []>} : vector<8x128xbf16>, vector<128x128xbf16>, vector<8x128xf32> -> vector<8x128xf32>
    %c0_33 = arith.constant 0 : index
    %c0_34 = arith.constant 0 : index
    %44 = vector.load %arg13[%c0_33, %c0_34] : memref<1x128xf32, #tpu.memory_space<vmem>>, vector<1x128xf32>
    %45 = vector.broadcast %44 : vector<1x128xf32> to vector<8x128xf32>
    %46 = arith.addf %43, %45 : vector<8x128xf32>
    %c0_35 = arith.constant 0 : index
    %c0_36 = arith.constant 0 : index
    %47 = vector.load %arg14[%c0_35, %c0_36] : memref<8x128xf32, #tpu.memory_space<vmem>>, vector<8x128xf32>
    tpu.vector_store %arg14[%c0_35, %c0_36], %46 {strides = array<i32>} : memref<8x128xf32, #tpu.memory_space<vmem>>, vector<8x128xf32>,
    return
  }
  func.func @transform_0(%arg0: i32) -> (i32, i32) {
    %c0_i32 = arith.constant 0 : i32
    %c0_i32_0 = arith.constant 0 : i32
    return %arg0, %c0_i32 : i32, i32
  }
  func.func @transform_1(%arg0: i32) -> (i32, i32) {
    %c0_i32 = arith.constant 0 : i32
    %c0_i32_0 = arith.constant 0 : i32
    %c0_i32_1 = arith.constant 0 : i32
    return %c0_i32, %c0_i32_0 : i32, i32
  }
  func.func @transform_2(%arg0: i32) -> (i32, i32) {
    %c0_i32 = arith.constant 0 : i32
    %c0_i32_0 = arith.constant 0 : i32
    %c0_i32_1 = arith.constant 0 : i32
    return %c0_i32, %c0_i32_0 : i32, i32
  }
  func.func @transform_3(%arg0: i32) -> (i32, i32) {
    %c0_i32 = arith.constant 0 : i32
    %c0_i32_0 = arith.constant 0 : i32
    %c0_i32_1 = arith.constant 0 : i32
    return %c0_i32, %c0_i32_0 : i32, i32
  }
  func.func @transform_4(%arg0: i32) -> (i32, i32) {
    %c0_i32 = arith.constant 0 : i32
    %c0_i32_0 = arith.constant 0 : i32
    %c0_i32_1 = arith.constant 0 : i32
    return %c0_i32, %c0_i32_0 : i32, i32
  }
  func.func @transform_5(%arg0: i32) -> (i32, i32) {
    %c0_i32 = arith.constant 0 : i32
    %c0_i32_0 = arith.constant 0 : i32
    %c0_i32_1 = arith.constant 0 : i32
    return %c0_i32, %c0_i32_0 : i32, i32
  }
  func.func @transform_6(%arg0: i32) -> (i32, i32) {
    %c0_i32 = arith.constant 0 : i32
    %c0_i32_0 = arith.constant 0 : i32
    %c0_i32_1 = arith.constant 0 : i32
    return %c0_i32, %c0_i32_0 : i32, i32
  }
  func.func @transform_7(%arg0: i32) -> (i32, i32) {
    %c0_i32 = arith.constant 0 : i32
    %c0_i32_0 = arith.constant 0 : i32
    %c0_i32_1 = arith.constant 0 : i32
    return %c0_i32, %c0_i32_0 : i32, i32
  }
  func.func @transform_8(%arg0: i32) -> (i32, i32) {
    %c0_i32 = arith.constant 0 : i32
    %c0_i32_0 = arith.constant 0 : i32
    %c0_i32_1 = arith.constant 0 : i32
    return %c0_i32, %c0_i32_0 : i32, i32
  }
  func.func @transform_9(%arg0: i32) -> (i32, i32) {
    %c0_i32 = arith.constant 0 : i32
    %c0_i32_0 = arith.constant 0 : i32
    %c0_i32_1 = arith.constant 0 : i32
    return %c0_i32, %c0_i32_0 : i32, i32
  }
  func.func @transform_10(%arg0: i32) -> (i32, i32) {
    %c0_i32 = arith.constant 0 : i32
    %c0_i32_0 = arith.constant 0 : i32
    %c0_i32_1 = arith.constant 0 : i32
    return %c0_i32, %c0_i32_0 : i32, i32
  }
  func.func @transform_11(%arg0: i32) -> (i32, i32) {
    %c0_i32 = arith.constant 0 : i32
    %c0_i32_0 = arith.constant 0 : i32
    %c0_i32_1 = arith.constant 0 : i32
    return %c0_i32, %c0_i32_0 : i32, i32
  }
  func.func @transform_12(%arg0: i32) -> (i32, i32) {
    %c0_i32 = arith.constant 0 : i32
    %c0_i32_0 = arith.constant 0 : i32
    %c0_i32_1 = arith.constant 0 : i32
    return %c0_i32, %c0_i32_0 : i32, i32
  }
  func.func @transform_13(%arg0: i32) -> (i32, i32) {
    %c0_i32 = arith.constant 0 : i32
    %c0_i32_0 = arith.constant 0 : i32
    return %arg0, %c0_i32 : i32, i32
  }
}

</mosaic_0001>

<bundles_post_ra>
// kernel: net_forward.1
= control target key start
LH: loop header
LB: loop body
LE: loop exit
PB: predicated region body
PF: predicated region fallthrough
CT: control target
= control target key end

     0   :  { %18 = vsyncpa [#allocation3], 0  ;;  %s1682_s0 = inlined_call_operand.hbm [shape: f32[8,32], index: 0, kind: input, shape index: {}]   ;;  %s1683_s1 = inlined_call_operand.hbm [shape: bf16[32,128], index: 1, kind: input, shape index: {}]   ;;  %s1684_s2 = inlined_call_operand.hbm [shape: f32[1,128], index: 2, kind: input, shape index: {}]   ;;  %s1685_s3 = inlined_call_operand.hbm [shape: bf16[128,128], index: 3, kind: input, shape index: {}]   ;;  %s1686_s4 = inlined_call_operand.vmem [shape: f32[1,128], index: 4, kind: input, shape index: {}]   ;;  %s1687_s5 = inlined_call_operand.hbm [shape: bf16[128,384], index: 5, kind: input, shape index: {}]   ;;  %s1688_s6 = inlined_call_operand.hbm [shape: f32[1,384], index: 6, kind: input, shape index: {}]   ;;  %s1689_s7 = inlined_call_operand.hbm [shape: bf16[384,128], index: 7, kind: input, shape index: {}]   ;;  %s1690_s8 = inlined_call_operand.vmem [shape: f32[1,128], index: 8, kind: input, shape index: {}]   ;;  %s1691_s9 = inlined_call_operand.hbm [shape: bf16[128,128], index: 9, kind: input, shape index: {}]   ;;  %s1692_s10 = inlined_call_operand.vmem [shape: f32[1,128], index: 10, kind: input, shape index: {}]   ;;  %s1693_s11 = inlined_call_operand.hbm [shape: bf16[128,128], index: 11, kind: input, shape index: {}]   ;;  %s1694_s12 = inlined_call_operand.vmem [shape: f32[1,128], index: 12, kind: input, shape index: {}]   ;;  %s1695_s13 = inlined_call_operand.vmem [shape: f32[8,128], index: 13, kind: output, shape index: {}]  }
   0x1   :  { %19 = vsyncpa [#allocation5], 0 }
   0x2   :  { %20 = vsyncpa [#allocation8], 0 }
   0x3   :  { %21 = vsyncpa [#allocation11], 0  ;;  %s38_s27 = sshll.u32 %s1683_s1, 4  ;;  %s39_s27 = int_to_ptr.hbm [resolvable:$true] %s38_s27 }
   0x4   :  { %22 = vsyncpa [#allocation14], 0  ;;  %s1542_s28 = smov [#allocation4]   ;;  %s62_s15 = sshll.u32 %s1685_s3, 4  ;;  %s63_s15 = int_to_ptr.hbm [resolvable:$true] %s62_s15 }
   0x5   :  { %s40_s29 = sshll.u32 %s1542_s28, 4  ;;  %s1543_s16 = smov 64   ;;  %s41_s29 = int_to_ptr.vmem [resolvable:$true] %s40_s29 }
   0x6   :  { %s1544_s17 = smov 4   ;;  %s1545_s18 = smov [#allocation7]  }
   0x7   :  { %46 = dma.hbm_to_vmem [thread:$0]  %s39_s27, 256, %s41_s29, [#allocation5], %s1543_s16, %s1543_s16, %s1544_s17  }
   0x8   :  { %s64_s19 = sshll.u32 %s1545_s18, 4  ;;  %s91_s21 = sshll.u32 %s1688_s6, 4  ;;  %s65_s19 = int_to_ptr.vmem [resolvable:$true] %s64_s19  ;;  %s92_s21 = int_to_ptr.hbm [resolvable:$true] %s91_s21 }
   0x9   :  { %70 = dma.hbm_to_vmem [thread:$0]  %s63_s15, 1024, %s65_s19, [#allocation8], %s1543_s16, %s1543_s16, %s1544_s17  }
   0xa   :  { %s116_s23 = sshll.u32 %s1691_s9, 4  ;;  %s1546_s24 = smov [#allocation10]   ;;  %s117_s23 = int_to_ptr.hbm [resolvable:$true] %s116_s23 }
   0xb   :  { %s93_s25 = sshll.u32 %s1546_s24, 4  ;;  %s1547_s26 = smov [#allocation13]   ;;  %s94_s25 = int_to_ptr.vmem [resolvable:$true] %s93_s25 }
   0xc   :  { %96 = dma.hbm_to_vmem [thread:$0]  %s92_s21, 48, %s94_s25, [#allocation11]  }
   0xd   :  { %s118_s27 = sshll.u32 %s1547_s26, 4  ;;  %s28_s6 = sshll.u32 %s1682_s0, 4  ;;  %s119_s27 = int_to_ptr.vmem [resolvable:$true] %s118_s27  ;;  %s29_s6 = int_to_ptr.hbm [resolvable:$true] %s28_s6 }
   0xe   :  { %124 = dma.hbm_to_vmem [thread:$0]  %s117_s23, 1024, %s119_s27, [#allocation14], %s1543_s16, %s1543_s16, %s1544_s17  }
   0xf   :  { %s52_s9 = sshll.u32 %s1684_s2, 4  ;;  %s1548_s15 = smov [#allocation2]   ;;  %s53_s9 = int_to_ptr.hbm [resolvable:$true] %s52_s9 }
  0x10   :  { %s30_s18 = sshll.u32 %s1548_s15, 4  ;;  %s1549_s19 = smov [#allocation6]   ;;  %s31_s18 = int_to_ptr.vmem [resolvable:$true] %s30_s18 }
  0x11   :  { %33 = dma.hbm_to_vmem [thread:$0]  %s29_s6, 128, %s31_s18, [#allocation3]  }
  0x12   :  { %s54_s20 = sshll.u32 %s1549_s19, 4  ;;  %s77_s0 = sshll.u32 %s1687_s5, 4  ;;  %s55_s20 = int_to_ptr.vmem [resolvable:$true] %s54_s20  ;;  %s78_s0 = int_to_ptr.hbm [resolvable:$true] %s77_s0 }
  0x13   :  { %57 = dma.hbm_to_vmem [thread:$0]  %s53_s9, 16, %s55_s20, [#allocation5]  }
  0x14   :  { %s1550_s3 = smov [#allocation9]   ;;  %s101_s2 = sshll.u32 %s1689_s7, 4  ;;  %s102_s2 = int_to_ptr.hbm [resolvable:$true] %s101_s2 }
  0x15   :  { %s79_s22 = sshll.u32 %s1550_s3, 4  ;;  %s1551_s25 = smov 192   ;;  %s80_s22 = int_to_ptr.vmem [resolvable:$true] %s79_s22 }
  0x16   :  { %s1552_s26 = smov 12   ;;  %s1553_s27 = smov [#allocation12]  }
  0x17   :  { %85 = dma.hbm_to_vmem [thread:$0]  %s78_s0, 3072, %s80_s22, [#allocation8], %s1551_s25, %s1551_s25, %s1552_s26  }
  0x18   :  { %s103_s28 = sshll.u32 %s1553_s27, 4  ;;  %s131_s5 = sshll.u32 %s1693_s11, 4  ;;  %s104_s28 = int_to_ptr.vmem [resolvable:$true] %s103_s28  ;;  %s132_s5 = int_to_ptr.hbm [resolvable:$true] %s131_s5 }
  0x19   :  { %109 = dma.hbm_to_vmem [thread:$0]  %s102_s2, 3072, %s104_s28, [#allocation11], %s1543_s16, %s1543_s16, %s1544_s17  }
  0x1a   :  { %s1554_s30 = smov [#allocation15]  }
  0x1b   :  { %s133_s14 = sshll.u32 %s1554_s30, 4  ;;  %s134_s14 = int_to_ptr.vmem [resolvable:$true] %s133_s14 }
  0x1c   :  { %139 = dma.hbm_to_vmem [thread:$0]  %s132_s5, 1024, %s134_s14, [#allocation14], %s1543_s16, %s1543_s16, %s1544_s17  }
  0x1d   :  { %1532 = dma.done.wait [#allocation3], 128  }
  0x1e   :  { %1533 = vsyncadd [#allocation3], 4294967168 }
  0x1f   :  { %1534 = dma.done.wait [#allocation5], 272  }
  0x20   :  { %1535 = vsyncadd [#allocation5], 4294967024 }
  0x21   :  { %1536 = dma.done.wait [#allocation8], 4096  }
  0x22   :  { %1537 = vsyncadd [#allocation8], 4294963200 }
  0x23   :  { %1538 = dma.done.wait [#allocation11], 3120  }
  0x24   :  { %1539 = vsyncadd [#allocation11], 4294964176 }
  0x25   :  { %1540 = dma.done.wait [#allocation14], 2048  }
  0x26   :  { %1541 = vsyncadd [#allocation14], 4294965248  ;;  %v1225_v0 = vld [vmem:[#allocation4 + $0x8] sm:$0xff]  ;;  %v1224_v2 = vld [vmem:[#allocation4] sm:$0xff]  ;;  %vm201_vm0 = vcmask 261120  }
  0x27   :  { %v1233_v1 = vld [vmem:[#allocation7 + $0x38] sm:$0xff]  ;;  %211 = vmatpush.bf16.msra.mxu0 %v1225_v0  ;;  %v179_v3 = vld [vmem:[#allocation2] sm:$0xff]  ;;  %v1232_v4 = vld [vmem:[#allocation7 + $0x30] sm:$0xff] }
  0x28   :  { %288 = vmatpush.bf16.msra.mxu1 %v1233_v1  ;;  %v180_v5 = vpack.c.bf16 %v179_v3, %v179_v3  ;;  %v1231_v6 = vld [vmem:[#allocation7 + $0x28] sm:$0xff]  ;;  %v1230_v7 = vld [vmem:[#allocation7 + $0x20] sm:$0xff]  ;;  %v1229_v8 = vld [vmem:[#allocation7 + $0x18] sm:$0xff] }
  0x29   :  { %v1228_v9 = vld [vmem:[#allocation7 + $0x10] sm:$0xff]  ;;  %v1227_v10 = vld [vmem:[#allocation7 + $0x8] sm:$0xff]  ;;  %v1226_v11 = vld [vmem:[#allocation7] sm:$0xff] }
  0x2a   :  { %v1054_v12 = vld [vmem:[#allocation9 + $0xa8] sm:$0xf]  ;;  %v1256_v13 = vld [vmem:[#allocation9 + $0xb0] sm:$0xf0]  ;;  %v1255_v14 = vld [vmem:[#allocation9 + $0xac] sm:$0xf] }
  0x2b   :  { %212 = vmatpush.bf16.msra.mxu0 %v1224_v2  ;;  %v1055_v15 = vor.u32 %v1256_v13, %v1054_v12  ;;  %v1056_v16 = vld [vmem:[#allocation9 + $0xb4] sm:$0xf0]  ;;  %v1062_v17 = vld [vmem:[#allocation9 + $0xb0] sm:$0xf]  ;;  %v1257_v18 = vld [vmem:[#allocation9 + $0xb8] sm:$0xf0] }
  0x2c   :  { %289 = vmatpush.bf16.msra.mxu1 %v1232_v4  ;;  %v1059_v19 = vor.u32 %v1255_v14, %v1056_v16  ;;  %v1063_v20 = vor.u32 %v1257_v18, %v1062_v17  ;;  %v1042_v21 = vld [vmem:[#allocation9 + $0x90] sm:$0xf]  ;;  %v1253_v22 = vld [vmem:[#allocation9 + $0x98] sm:$0xf0]  ;;  %v1252_v23 = vld [vmem:[#allocation9 + $0x94] sm:$0xf] }
  0x2d   :  { %471 = vmatpush.bf16.msra.mxu2 %v1055_v15  ;;  %v1043_v24 = vor.u32 %v1253_v22, %v1042_v21  ;;  %v1044_v25 = vld [vmem:[#allocation9 + $0x9c] sm:$0xf0]  ;;  %v1050_v26 = vld [vmem:[#allocation9 + $0x98] sm:$0xf]  ;;  %v1254_v27 = vld [vmem:[#allocation9 + $0xa0] sm:$0xf0] }
  0x2e   :  { %935 = vmatmul.msk.bf16.vlgmr.msra.gmra.mxu0 %vm201_vm0, %v180_v5  ;;  %484 = vmatpush.bf16.msra.mxu3 %v1059_v19  ;;  %v1047_v28 = vor.u32 %v1252_v23, %v1044_v25  ;;  %v1051_v29 = vor.u32 %v1254_v27, %v1050_v26  ;;  %v1030_v30 = vld [vmem:[#allocation9 + $0x78] sm:$0xf]  ;;  %v1250_v31 = vld [vmem:[#allocation9 + $0x80] sm:$0xf0]  ;;  %v1249_v32 = vld [vmem:[#allocation9 + $0x7c] sm:$0xf] }
  0x2f   :  { %497 = vmatpush.bf16.msrb.mxu0 %v1063_v20  ;;  %v1032_v33 = vld [vmem:[#allocation9 + $0x84] sm:$0xf0]  ;;  %v1038_v34 = vld [vmem:[#allocation9 + $0x80] sm:$0xf]  ;;  %v1251_v35 = vld [vmem:[#allocation9 + $0x88] sm:$0xf0]  ;;  %v1031_v36 = vor.u32 %v1250_v31, %v1030_v30 }
  0x30   :  { %290 = vmatpush.bf16.msra.mxu1 %v1231_v6  ;;  %v1035_v37 = vor.u32 %v1249_v32, %v1032_v33  ;;  %v1039_v38 = vor.u32 %v1251_v35, %v1038_v34  ;;  %v1018_v39 = vld [vmem:[#allocation9 + $0x60] sm:$0xf]  ;;  %v1247_v40 = vld [vmem:[#allocation9 + $0x68] sm:$0xf0]  ;;  %v1246_v41 = vld [vmem:[#allocation9 + $0x64] sm:$0xf] }
  0x31   :  { %472 = vmatpush.bf16.msra.mxu2 %v1043_v24  ;;  %v1020_v42 = vld [vmem:[#allocation9 + $0x6c] sm:$0xf0]  ;;  %v1026_v43 = vld [vmem:[#allocation9 + $0x68] sm:$0xf]  ;;  %v1248_v44 = vld [vmem:[#allocation9 + $0x70] sm:$0xf0]  ;;  %v1019_v45 = vor.u32 %v1247_v40, %v1018_v39 }
  0x32   :  { %485 = vmatpush.bf16.msra.mxu3 %v1047_v28  ;;  %v1023_v46 = vor.u32 %v1246_v41, %v1020_v42  ;;  %v1027_v47 = vor.u32 %v1248_v44, %v1026_v43  ;;  %v1006_v48 = vld [vmem:[#allocation9 + $0x48] sm:$0xf]  ;;  %v1244_v49 = vld [vmem:[#allocation9 + $0x50] sm:$0xf0]  ;;  %v1243_v50 = vld [vmem:[#allocation9 + $0x4c] sm:$0xf] }
  0x33   :  { %498 = vmatpush.bf16.msrb.mxu0 %v1051_v29  ;;  %v1008_v51 = vld [vmem:[#allocation9 + $0x54] sm:$0xf0]  ;;  %v1014_v52 = vld [vmem:[#allocation9 + $0x50] sm:$0xf]  ;;  %v1245_v53 = vld [vmem:[#allocation9 + $0x58] sm:$0xf0]  ;;  %v1007_v54 = vor.u32 %v1244_v49, %v1006_v48 }
  0x34   :  { %291 = vmatpush.bf16.msra.mxu1 %v1230_v7  ;;  %v1011_v55 = vor.u32 %v1243_v50, %v1008_v51  ;;  %v1015_v56 = vor.u32 %v1245_v53, %v1014_v52  ;;  %v994_v57 = vld [vmem:[#allocation9 + $0x30] sm:$0xf]  ;;  %v1241_v58 = vld [vmem:[#allocation9 + $0x38] sm:$0xf0]  ;;  %v1240_v59 = vld [vmem:[#allocation9 + $0x34] sm:$0xf] }
  0x35   :  { %473 = vmatpush.bf16.msra.mxu2 %v1031_v36  ;;  %v996_v60 = vld [vmem:[#allocation9 + $0x3c] sm:$0xf0]  ;;  %v1002_v61 = vld [vmem:[#allocation9 + $0x38] sm:$0xf]  ;;  %v1242_v62 = vld [vmem:[#allocation9 + $0x40] sm:$0xf0]  ;;  %v995_v63 = vor.u32 %v1241_v58, %v994_v57 }
  0x36   :  { %486 = vmatpush.bf16.msra.mxu3 %v1035_v37  ;;  %v999_v0 = vor.u32 %v1240_v59, %v996_v60  ;;  %v1003_v1 = vor.u32 %v1242_v62, %v1002_v61  ;;  %v1311_v2 = vld [vmem:[#allocation6] ss:$0 sm:$0xff]  ;;  %v984_v12 = vld [vmem:[#allocation9 + $0x24] sm:$0xf0]  ;;  %v990_v13 = vld [vmem:[#allocation9 + $0x20] sm:$0xf] }
  0x37   :  { %499 = vmatpush.bf16.msrb.mxu0 %v1039_v38  ;;  %v1239_v14 = vld [vmem:[#allocation9 + $0x28] sm:$0xf0]  ;;  %v970_v17 = vld [vmem:[#allocation9] sm:$0xf]  ;;  %v1234_v19 = vld [vmem:[#allocation9 + $0x4] sm:$0xf] }
  0x38   :  { %292 = vmatpush.bf16.msra.mxu1 %v1229_v8  ;;  %v982_v8 = vld [vmem:[#allocation9 + $0x18] sm:$0xf]  ;;  %v991_v16 = vor.u32 %v1239_v14, %v990_v13  ;;  %v1235_v18 = vld [vmem:[#allocation9 + $0x8] sm:$0xf0]  ;;  %v972_v21 = vld [vmem:[#allocation9 + $0xc] sm:$0xf0] }
  0x39   :  { %474 = vmatpush.bf16.msra.mxu2 %v1019_v45  ;;  %v971_v20 = vor.u32 %v1235_v18, %v970_v17  ;;  %v978_v22 = vld [vmem:[#allocation9 + $0x8] sm:$0xf]  ;;  %v1236_v23 = vld [vmem:[#allocation9 + $0x10] sm:$0xf0]  ;;  %v975_v24 = vor.u32 %v1234_v19, %v972_v21  ;;  %v1281_v26 = vld [vmem:[#allocation12 + $0xb8] sm:$0xff] }
  0x3a   :  { %487 = vmatpush.bf16.msra.mxu3 %v1023_v46  ;;  %v979_v25 = vor.u32 %v1236_v23, %v978_v22  ;;  %v1265_v27 = vld [vmem:[#allocation12 + $0x38] sm:$0xff]  ;;  %v1280_v29 = vld [vmem:[#allocation12 + $0xb0] sm:$0xff]  ;;  %v1279_v32 = vld [vmem:[#allocation12 + $0xa8] sm:$0xff] }
  0x3b   :  { %500 = vmatpush.bf16.msrb.mxu0 %v1027_v47  ;;  %v1273_v28 = vld [vmem:[#allocation12 + $0x78] sm:$0xff]  ;;  %v1264_v30 = vld [vmem:[#allocation12 + $0x30] sm:$0xff]  ;;  %v1263_v33 = vld [vmem:[#allocation12 + $0x28] sm:$0xff] }
  0x3c   :  { %293 = vmatpush.bf16.msra.mxu1 %v1228_v9  ;;  %v1238_v9 = vld [vmem:[#allocation9 + $0x20] sm:$0xf0]  ;;  %v1272_v31 = vld [vmem:[#allocation12 + $0x70] sm:$0xff]  ;;  %v1271_v34 = vld [vmem:[#allocation12 + $0x68] sm:$0xff] }
  0x3d   :  { %475 = vmatpush.bf16.msra.mxu2 %v1007_v54  ;;  %v1278_v35 = vld [vmem:[#allocation12 + $0xa0] sm:$0xff]  ;;  %v1277_v38 = vld [vmem:[#allocation12 + $0x98] sm:$0xff]  ;;  %v1276_v41 = vld [vmem:[#allocation12 + $0x90] sm:$0xff] }
  0x3e   :  { %488 = vmatpush.bf16.msra.mxu3 %v1011_v55  ;;  %v1262_v36 = vld [vmem:[#allocation12 + $0x20] sm:$0xff]  ;;  %v1261_v39 = vld [vmem:[#allocation12 + $0x18] sm:$0xff]  ;;  %v1275_v48 = vld [vmem:[#allocation12 + $0x88] sm:$0xff] }
  0x3f   :  { %501 = vmatpush.bf16.msrb.mxu0 %v1015_v56  ;;  %v1270_v37 = vld [vmem:[#allocation12 + $0x60] sm:$0xff]  ;;  %v1269_v40 = vld [vmem:[#allocation12 + $0x58] sm:$0xff]  ;;  %v1260_v49 = vld [vmem:[#allocation12 + $0x10] sm:$0xff] }
  0x40   :  { %294 = vmatpush.bf16.msra.mxu1 %v1227_v10  ;;  %v1237_v10 = vld [vmem:[#allocation9 + $0x1c] sm:$0xf]  ;;  %v1312_v42 = vld [vmem:[%s1686_s4] ss:$0 sm:$0xff]  ;;  %v1268_v50 = vld [vmem:[#allocation12 + $0x50] sm:$0xff] }
  0x41   :  { %476 = vmatpush.bf16.msra.mxu2 %v995_v63  ;;  %v987_v15 = vor.u32 %v1237_v10, %v984_v12  ;;  %v1274_v51 = vld [vmem:[#allocation12 + $0x80] sm:$0xff]  ;;  %v1259_v52 = vld [vmem:[#allocation12 + $0x8] sm:$0xff]  ;;  %v1289_v56 = vld [vmem:[#allocation13 + $0x38] sm:$0xff] }
  0x42   :  { %489 = vmatpush.bf16.msra.mxu3 %v999_v0  ;;  %v1267_v53 = vld [vmem:[#allocation12 + $0x48] sm:$0xff]  ;;  %v1258_v54 = vld [vmem:[#allocation12] sm:$0xff]  ;;  %v1288_v57 = vld [vmem:[#allocation13 + $0x30] sm:$0xff] }
  0x43   :  { %502 = vmatpush.bf16.msrb.mxu0 %v1003_v1  ;;  %v1266_v55 = vld [vmem:[#allocation12 + $0x40] sm:$0xff]  ;;  %v1287_v58 = vld [vmem:[#allocation13 + $0x28] sm:$0xff]  ;;  %v335_v60 = vld [vmem:[#allocation10] sm:$0x7] }
  0x44   :  { %295 = vmatpush.bf16.msra.mxu1 %v1226_v11  ;;  %v983_v11 = vor.u32 %v1238_v9, %v982_v8  ;;  %v1286_v59 = vld [vmem:[#allocation13 + $0x20] sm:$0xff]  ;;  %v339_v61 = vperm.slane %v335_v60, 2  ;;  %v337_v0 = vperm.slane %v335_v60, 0  ;;  %v338_v1 = vperm.slane %v335_v60, 1  ;;  %v1283_v17 = vld [vmem:[#allocation13 + $0x8] sm:$0xff]  ;;  %v1297_v19 = vld [vmem:[#allocation15 + $0x38] sm:$0xff] }
  0x45   :  { %v1282_v18 = vld [vmem:[#allocation13] sm:$0xff]  ;;  %v1295_v21 = vld [vmem:[#allocation15 + $0x28] sm:$0xff]  ;;  %v1293_v23 = vld [vmem:[#allocation15 + $0x18] sm:$0xff] }
  0x46   :  { %477 = vmatpush.bf16.msra.mxu2 %v983_v11  ;;  %490 = vmatpush.bf16.msra.mxu3 %v987_v15  ;;  %v1285_v15 = vld [vmem:[#allocation13 + $0x18] sm:$0xff]  ;;  %v1294_v22 = vld [vmem:[#allocation15 + $0x20] sm:$0xff] }
  0x47   :  { %503 = vmatpush.bf16.msrb.mxu0 %v991_v16  ;;  %v1284_v16 = vld [vmem:[#allocation13 + $0x10] sm:$0xff] }
  0x48   :  { %712 = vmatpush.bf16.msrb.mxu1 %v1265_v27  ;;  %v1292_v27 = vld [vmem:[#allocation15 + $0x10] sm:$0xff] }
  0x4a   :  { %478 = vmatpush.bf16.msra.mxu2 %v971_v20  ;;  %491 = vmatpush.bf16.msra.mxu3 %v975_v24  ;;  %v1296_v20 = vld [vmem:[#allocation15 + $0x30] sm:$0xff] }
  0x4b   :  { %504 = vmatpush.bf16.msrb.mxu0 %v979_v25  ;;  %v1313_v25 = vld [vmem:[%s1690_s8] ss:$0 sm:$0xff] }
  0x4c   :  { %713 = vmatpush.bf16.msrb.mxu1 %v1264_v30 }
  0x4e   :  { %738 = vmatpush.bf16.msrb.mxu3 %v1281_v26  ;;  %725 = vmatpush.bf16.msrb.mxu2 %v1273_v28 }
  0x4f   :  { %821 = vmatpush.bf16.msra.mxu0 %v1289_v56 }
  0x50   :  { %714 = vmatpush.bf16.msrb.mxu1 %v1263_v33 }
  0x52   :  { %739 = vmatpush.bf16.msrb.mxu3 %v1280_v29  ;;  %726 = vmatpush.bf16.msrb.mxu2 %v1272_v31 }
  0x53   :  { %822 = vmatpush.bf16.msra.mxu0 %v1288_v57 }
  0x54   :  { %715 = vmatpush.bf16.msrb.mxu1 %v1262_v36 }
  0x56   :  { %740 = vmatpush.bf16.msrb.mxu3 %v1279_v32  ;;  %727 = vmatpush.bf16.msrb.mxu2 %v1271_v34 }
  0x57   :  { %823 = vmatpush.bf16.msra.mxu0 %v1287_v58 }
  0x58   :  { %716 = vmatpush.bf16.msrb.mxu1 %v1261_v39  ;;  %v1314_v39 = vld [vmem:[%s1692_s10] ss:$0 sm:$0xff] }
  0x5a   :  { %741 = vmatpush.bf16.msrb.mxu3 %v1278_v35  ;;  %728 = vmatpush.bf16.msrb.mxu2 %v1270_v37  ;;  %v1291_v37 = vld [vmem:[#allocation15 + $0x8] sm:$0xff] }
  0x5b   :  { %824 = vmatpush.bf16.msra.mxu0 %v1286_v59 }
  0x5c   :  { %717 = vmatpush.bf16.msrb.mxu1 %v1260_v49 }
  0x5e   :  { %742 = vmatpush.bf16.msrb.mxu3 %v1277_v38  ;;  %729 = vmatpush.bf16.msrb.mxu2 %v1269_v40  ;;  %v1290_v38 = vld [vmem:[#allocation15] sm:$0xff] }
  0x5f   :  { %825 = vmatpush.bf16.msra.mxu0 %v1285_v15 }
  0x60   :  { %718 = vmatpush.bf16.msrb.mxu1 %v1259_v52 }
  0x62   :  { %743 = vmatpush.bf16.msrb.mxu3 %v1276_v41  ;;  %730 = vmatpush.bf16.msrb.mxu2 %v1268_v50 }
  0x63   :  { %826 = vmatpush.bf16.msra.mxu0 %v1284_v16 }
  0x64   :  { %719 = vmatpush.bf16.msrb.mxu1 %v1258_v54 }
  0x66   :  { %744 = vmatpush.bf16.msrb.mxu3 %v1275_v48  ;;  %731 = vmatpush.bf16.msrb.mxu2 %v1267_v53 }
  0x67   :  { %827 = vmatpush.bf16.msra.mxu0 %v1283_v17 }
  0x6a   :  { %745 = vmatpush.bf16.msrb.mxu3 %v1274_v51  ;;  %732 = vmatpush.bf16.msrb.mxu2 %v1266_v55 }
  0x6b   :  { %828 = vmatpush.bf16.msra.mxu0 %v1282_v18 }
  0xab   :  { %v214_v3 = vpop.f32.mrf.mxu0 }
  0xac   :  { %v215_v4 = vadd.f32 %v1311_v2, %v214_v3 }
  0xae   :  { %v218_v5 = vmax.f32 %v215_v4, 0.0 }
  0xb0   :  { %v219_v6 = vpack.c.bf16 %v218_v5, %v218_v5 }
  0xb2   :  { %296 = vmatmul.bf16.vlgmr.msra.gmra.mxu1 %v219_v6 }
  0xb3   :  { %v216_v7 = vpop.f32.mrf.mxu0  ;;  %904 = vmatpush.bf16.msra.mxu1 %v1297_v19 }
  0xb7   :  { %905 = vmatpush.bf16.msra.mxu1 %v1296_v20 }
  0xbb   :  { %906 = vmatpush.bf16.msra.mxu1 %v1295_v21 }
  0xbf   :  { %907 = vmatpush.bf16.msra.mxu1 %v1294_v22 }
  0xc3   :  { %908 = vmatpush.bf16.msra.mxu1 %v1293_v23 }
  0xc7   :  { %909 = vmatpush.bf16.msra.mxu1 %v1292_v27 }
  0xcb   :  { %910 = vmatpush.bf16.msra.mxu1 %v1291_v37 }
  0xcf   :  { %911 = vmatpush.bf16.msra.mxu1 %v1290_v38 }
 0x12f   :  { %v297_v43 = vpop.f32.mrf.mxu1 }
 0x130   :  { %v298_v44 = vadd.f32 %v1312_v42, %v297_v43 }
 0x132   :  { %v301_v45 = vmax.f32 %v298_v44, 0.0 }
 0x134   :  { %v302_v46 = vpack.c.bf16 %v301_v45, %v301_v45  ;;  %v1315_v45 = vld [vmem:[%s1694_s12] ss:$0 sm:$0xff] }
 0x136   :  { %479 = vmatmul.bf16.vlgmr.msra.gmra.mxu2 %v302_v46  ;;  %492 = vmatmul.bf16.vlgmr.msra.gmra.mxu3 %v302_v46 }
 0x137   :  { %505 = vmatmul.bf16.vlgmr.msrb.gmra.mxu0 %v302_v46  ;;  %v299_v47 = vpop.f32.mrf.mxu1 }
 0x1b4   :  { %v506_v62 = vpop.f32.mrf.mxu0 }
 0x1b5   :  { %v507_v63 = vadd.f32 %v506_v62, %v339_v61 }
 0x1b7   :  { %v512_v2 = vmax.f32 %v507_v63, 0.0 }
 0x1b9   :  { %v515_v3 = vpack.c.bf16 %v512_v2, %v512_v2  ;;  %v480_v4 = vpop.f32.mrf.mxu2  ;;  %v493_v5 = vpop.f32.mrf.mxu3 }
 0x1ba   :  { %v481_v6 = vadd.f32 %v480_v4, %v337_v0  ;;  %v494_v7 = vadd.f32 %v493_v5, %v338_v1 }
 0x1bb   :  { %746 = vmatmul.bf16.vlgmr.msrb.gmra.mxu3 %v515_v3 }
 0x1bc   :  { %v510_v8 = vmax.f32 %v481_v6, 0.0  ;;  %v511_v9 = vmax.f32 %v494_v7, 0.0  ;;  %v508_v10 = vpop.f32.mrf.mxu0 }
 0x1be   :  { %v513_v11 = vpack.c.bf16 %v510_v8, %v510_v8  ;;  %v514_v12 = vpack.c.bf16 %v511_v9, %v511_v9 }
 0x1c0   :  { %720 = vmatmul.bf16.vlgmr.msrb.gmra.mxu1 %v513_v11  ;;  %733 = vmatmul.bf16.vlgmr.msrb.gmra.mxu2 %v514_v12 }
 0x1c1   :  { %v482_v13 = vpop.f32.mrf.mxu2  ;;  %v495_v14 = vpop.f32.mrf.mxu3 }
 0x23d   :  { %v721_v24 = vpop.f32.mrf.mxu1 }
 0x23e   :  { %v747_v26 = vpop.f32.mrf.mxu3  ;;  %v722_v28 = vadd.f32 %v1313_v25, %v721_v24 }
 0x243   :  { %v734_v29 = vpop.f32.mrf.mxu2 }
 0x244   :  { %v735_v30 = vadd.f32 %v734_v29, %v722_v28 }
 0x245   :  { %v723_v31 = vpop.f32.mrf.mxu1 }
 0x246   :  { %v748_v32 = vadd.f32 %v747_v26, %v735_v30  ;;  %v749_v33 = vpop.f32.mrf.mxu3 }
 0x248   :  { %v751_v34 = vmax.f32 %v748_v32, 0.0 }
 0x24a   :  { %v752_v35 = vpack.c.bf16 %v751_v34, %v751_v34 }
 0x24b   :  { %v736_v36 = vpop.f32.mrf.mxu2 }
 0x24c   :  { %829 = vmatmul.bf16.vlgmr.msra.gmra.mxu0 %v752_v35 }
 0x2c9   :  { %v830_v40 = vpop.f32.mrf.mxu0 }
 0x2ca   :  { %v831_v41 = vadd.f32 %v1314_v39, %v830_v40 }
 0x2cc   :  { %v834_v42 = vmax.f32 %v831_v41, 0.0 }
 0x2ce   :  { %v835_v43 = vpack.c.bf16 %v834_v42, %v834_v42 }
 0x2d0   :  { %912 = vmatmul.bf16.vlgmr.msra.gmra.mxu1 %v835_v43 }
 0x2d1   :  { %v832_v44 = vpop.f32.mrf.mxu0 }
 0x34d   :  { %v913_v46 = vpop.f32.mrf.mxu1 }
 0x34e   :  { %v914_v47 = vadd.f32 %v1315_v45, %v913_v46 }
 0x350   :  { %917 = vst [vmem:[%s1695_s13] sm:$0xff] %v914_v47 }
 0x355   :  { %v915_v48 = vpop.f32.mrf.mxu1 }
 0x356   :  { %922 = vsyncpa [#allocation3], 1 }
 0x357   :  { %923 = vsyncpa [#allocation5], 1 }
 0x358   :  { %924 = vsyncpa [#allocation8], 1 }
 0x359   :  { %925 = vsyncpa [#allocation11], 1 }
 0x35a   :  { %926 = vsyncpa [#allocation14], 1 }

</bundles_post_ra>
